<compile_context>
chip_gen: v5e
topology: v5e:2x2
jax: 0.10.0
libtpu: 0.0.40
codegen_flags: <defaults>
</compile_context>

<pallas_src>
import numpy as np
import jax
import jax.numpy as jnp
from jax import lax
from jax.experimental import pallas as pl
from jax.experimental.pallas import tpu as pltpu

BIN_SIZES = (1, 3, 5)


# ----------------------------------------------------------------------------
# Glue: pool / bilinear-resize / boundary-mask matrices (numpy preprocessing).
# ----------------------------------------------------------------------------
def _adaptive_avg_pool_matrix(out_size, in_size):
    """P (out, in): pooled = P @ x, same windows as nn.AdaptiveAvgPool2d."""
    P = np.zeros((out_size, in_size), np.float32)
    for i in range(out_size):
        start = (i * in_size) // out_size
        end = -((-(i + 1) * in_size) // out_size)  # ceil((i+1)*in/out)
        P[i, start:end] = 1.0 / (end - start)
    return P


def _bilinear_resize_matrix(out_size, in_size, align_corners=False):
    """U (out, in): resized = U @ x, torch F.interpolate(mode='bilinear')."""
    U = np.zeros((out_size, in_size), np.float32)
    for i in range(out_size):
        if align_corners:
            src = 0.0 if out_size == 1 else i * (in_size - 1) / (out_size - 1)
        else:
            src = (i + 0.5) * in_size / out_size - 0.5
            if src < 0.0:
                src = 0.0
        i0 = min(int(np.floor(src)), in_size - 1)
        i1 = min(i0 + 1, in_size - 1)
        frac = src - i0
        U[i, i0] += 1.0 - frac
        U[i, i1] += frac
    return U


def _conv3x3_window_masks(H, W):
    """(9, H*W) float masks: 1 where the (dh,dw) shifted source pixel is in-bounds."""
    HW = H * W
    rr = np.repeat(np.arange(H), W)
    cc = np.tile(np.arange(W), H)
    masks = np.zeros((9, HW), np.float32)
    for dh in range(3):
        for dw in range(3):
            r2 = rr + dh - 1
            c2 = cc + dw - 1
            ok = (r2 >= 0) & (r2 < H) & (c2 >= 0) & (c2 < W)
            masks[dh * 3 + dw] = ok.astype(np.float32)
    return masks


def _round_up(x, m):
    return ((x + m - 1) // m) * m


# ----------------------------------------------------------------------------
# Pallas kernel
# ----------------------------------------------------------------------------
def _make_kernel(c_in, c_inter, c_out, n_stages, H, W, bpad):
    HW = H * W

    def kernel(x_ref, kt_ref, ut_ref, w1_ref, b1_ref, wc_ref, bc_ref,
               mask_ref, out_ref):
        x = x_ref[0]  # (c_in, HW), lane-dense

        # ---- pyramid stages: pool (all stages in one matmul) ----
        px = jnp.dot(x, kt_ref[...], preferred_element_type=jnp.float32)
        # px: (c_in, n_stages * bpad)

        # ---- per-stage 1x1 conv on the tiny pooled maps (MXU) ----
        ys = []
        for s in range(n_stages):
            ps = px[:, s * bpad:(s + 1) * bpad]              # (c_in, bpad)
            ys.append(jnp.dot(w1_ref[s], ps,
                              preferred_element_type=jnp.float32))
        y_cat = jnp.concatenate(ys, axis=1)                  # (c_inter, S*bpad)

        # ---- upsample + sum over stages in one matmul; add summed stage bias ----
        mid = jnp.dot(y_cat, ut_ref[...],
                      preferred_element_type=jnp.float32)    # (c_inter, HW)
        mid = mid + b1_ref[...]                              # (c_inter, 1) bcast

        # ---- final 3x3 conv (stride 1, zero padding 1) as one MXU matmul ----
        # Window value at flat index i is mid[i + shift]; out-of-bounds source
        # pixels are zeroed via host-precomputed (1, HW) masks (sublane bcast).
        wm = mask_ref[...]                                    # (9, HW)
        wins = []
        for dh in range(3):
            for dw in range(3):
                shift = (dh - 1) * W + (dw - 1)
                if shift == 0:
                    v = mid                                   # center: mask == 1
                else:
                    v = pltpu.roll(mid, (-shift) % HW, axis=1)
                    v = v * wm[dh * 3 + dw:dh * 3 + dw + 1, :]
                wins.append(v)
        win_cat = jnp.concatenate(wins, axis=0)               # (9*c_inter, HW)

        out = jnp.dot(wc_ref[...], win_cat,
                      preferred_element_type=jnp.float32) + bc_ref[...]
        out_ref[0] = out                                      # (c_out, HW)

    return kernel


def pp_context_module(x, params, bin_sizes=BIN_SIZES, align_corners=False):
    """Pallas implementation of PPContextModule.forward (NCHW, float32)."""
    B, c_in, H, W = x.shape
    HW = H * W
    W1, b1, Wc, bc = params["W1"], params["b1"], params["Wc"], params["bc"]
    n_stages = len(bin_sizes)
    c_inter = W1.shape[1]
    c_out = Wc.shape[0]

    # Per-stage Kronecker-factored pool / upsample operators on the flattened
    # spatial axis, zero-padded to a common slot width (glue, numpy).
    bpad = _round_up(max(s * s for s in bin_sizes), 8)
    kt_blocks, ut_blocks = [], []
    for s in bin_sizes:
        Ph = _adaptive_avg_pool_matrix(s, H)
        Pw = _adaptive_avg_pool_matrix(s, W)
        Uh = _bilinear_resize_matrix(H, s, align_corners)
        Uw = _bilinear_resize_matrix(W, s, align_corners)
        K = np.kron(Ph, Pw)          # (s*s, HW): pooled_vec = K @ vec(X)
        U = np.kron(Uh, Uw)          # (HW, s*s): up_vec = U @ pooled_vec
        Kt = np.zeros((HW, bpad), np.float32)
        Kt[:, :s * s] = K.T
        Ut = np.zeros((bpad, HW), np.float32)
        Ut[:s * s, :] = U.T
        kt_blocks.append(Kt)
        ut_blocks.append(Ut)
    kt_cat = jnp.asarray(np.concatenate(kt_blocks, axis=1))   # (HW, S*bpad)
    ut_cat = jnp.asarray(np.concatenate(ut_blocks, axis=0))   # (S*bpad, HW)

    # Small weights as lane-friendly VMEM matmul operands.
    w1 = jnp.asarray(W1, jnp.float32)                           # (S, c_inter, c_in)
    # Stage biases are uniform over the map after bilinear upsample (rows of U
    # sum to 1), so they collapse to a single per-channel constant.
    b1_total = jnp.sum(jnp.asarray(b1, jnp.float32), axis=0).reshape(c_inter, 1)
    # Wc[o, c, kh, kw] -> [o, (kh*3 + kw)*c_inter + c], matching window stacking.
    wc_flat = jnp.asarray(Wc, jnp.float32).transpose(0, 2, 3, 1).reshape(
        c_out, 9 * c_inter)
    bc_col = jnp.asarray(bc, jnp.float32).reshape(c_out, 1)
    win_masks = jnp.asarray(_conv3x3_window_masks(H, W))        # (9, HW)

    x_flat = x.reshape(B, c_in, HW)   # lane-dense activations (HW = 256)

    kernel = _make_kernel(c_in, c_inter, c_out, n_stages, H, W, bpad)
    out = pl.pallas_call(
        kernel,
        out_shape=jax.ShapeDtypeStruct((B, c_out, HW), jnp.float32),
        grid_spec=pltpu.PrefetchScalarGridSpec(
            num_scalar_prefetch=0,
            grid=(B,),
            in_specs=[
                pl.BlockSpec((1, c_in, HW), lambda b: (b, 0, 0)),
                pl.BlockSpec((HW, n_stages * bpad), lambda b: (0, 0)),
                pl.BlockSpec((n_stages * bpad, HW), lambda b: (0, 0)),
                pl.BlockSpec((n_stages, c_inter, c_in), lambda b: (0, 0, 0)),
                pl.BlockSpec((c_inter, 1), lambda b: (0, 0)),
                pl.BlockSpec((c_out, 9 * c_inter), lambda b: (0, 0)),
                pl.BlockSpec((c_out, 1), lambda b: (0, 0)),
                pl.BlockSpec((9, HW), lambda b: (0, 0)),
            ],
            out_specs=pl.BlockSpec((1, c_out, HW), lambda b: (b, 0, 0)),
        ),
        compiler_params=pltpu.CompilerParams(
            dimension_semantics=("parallel",)),
    )(x_flat, kt_cat, ut_cat, w1, b1_total, wc_flat, bc_col, win_masks)
    return out.reshape(B, c_out, H, W)


# ----------------------------------------------------------------------------
# Pure-JAX reference (independent formulation) for a sanity check.
# ----------------------------------------------------------------------------
def _reference(x, params, bin_sizes=BIN_SIZES, align_corners=False):
    B, c_in, H, W = x.shape
    W1, b1, Wc, bc = params["W1"], params["b1"], params["Wc"], params["bc"]
    mid = 0.0
    for s, size in enumerate(bin_sizes):
        Mh = jnp.asarray(_bilinear_resize_matrix(H, size, align_corners)
                         @ _adaptive_avg_pool_matrix(size, H))
        MwT = jnp.asarray((_bilinear_resize_matrix(W, size, align_corners)
                           @ _adaptive_avg_pool_matrix(size, W)).T)
        t = jnp.einsum("ph,bchw->bcpw", Mh, x)
        t = jnp.einsum("bcpw,wq->bcpq", t, MwT)
        y = jnp.einsum("oc,bcpq->bopq", W1[s], t) + b1[s][None, :, None, None]
        mid = mid + y
    out = lax.conv_general_dilated(
        mid, Wc, window_strides=(1, 1), padding=((1, 1), (1, 1)),
        dimension_numbers=("NCHW", "OIHW", "NCHW"))
    return out + bc[None, :, None, None]


if __name__ == "__main__":
    B, C_IN, C_INTER, C_OUT, H, W = 2, 4, 8, 4, 16, 16
    S = len(BIN_SIZES)

    key = jax.random.PRNGKey(0)
    ks = jax.random.split(key, 5)
    x = jax.random.normal(ks[0], (B, C_IN, H, W), jnp.float32)
    params = {
        # stage 1x1 convs: weight (S, C_inter, C_in), bias (S, C_inter)
        "W1": 0.3 * jax.random.normal(ks[1], (S, C_INTER, C_IN), jnp.float32),
        "b1": 0.1 * jax.random.normal(ks[2], (S, C_INTER), jnp.float32),
        # conv_out: 3x3, weight (C_out, C_inter, 3, 3), bias (C_out,)
        "Wc": 0.3 * jax.random.normal(ks[3], (C_OUT, C_INTER, 3, 3), jnp.float32),
        "bc": 0.1 * jax.random.normal(ks[4], (C_OUT,), jnp.float32),
    }

    out = pp_context_module(x, params)
    out = jax.block_until_ready(out)

    ref = jax.block_until_ready(_reference(x, params))
    assert out.shape == (B, C_OUT, H, W)
    if not np.allclose(np.asarray(out), np.asarray(ref), rtol=5e-3, atol=5e-3):
        raise AssertionError("Pallas kernel does not match reference")

    print("KERNEL_OK")
</pallas_src>

<mosaic_0001>
module attributes {stable_mosaic.version = 11 : i64} {
  func.func @kernel(%arg0: i32, %arg1: memref<1x4x256xf32, #tpu.memory_space<vmem>>, %arg2: memref<256x96xf32, #tpu.memory_space<vmem>>, %arg3: memref<96x256xf32, #tpu.memory_space<vmem>>, %arg4: memref<3x8x4xf32, #tpu.memory_space<vmem>>, %arg5: memref<8x1xf32, #tpu.memory_space<vmem>>, %arg6: memref<4x72xf32, #tpu.memory_space<vmem>>, %arg7: memref<4x1xf32, #tpu.memory_space<vmem>>, %arg8: memref<9x256xf32, #tpu.memory_space<vmem>>, %arg9: memref<1x4x256xf32, #tpu.memory_space<vmem>>) attributes {dimension_semantics = [#tpu.dimension_semantics<parallel>], iteration_bounds = array<i64: 2>, scalar_prefetch = 0 : i64, scratch_operands = 0 : i64, tpu.core_type = #tpu.core_type<tc>, window_params = [{transform_indices = @transform_0, window_bounds = array<i64: 1, 4, 256>}, {pipeline_mode = #tpu.pipeline_mode<synchronous>, transform_indices = @transform_1, window_bounds = array<i64: 256, 96>}, {pipeline_mode = #tpu.pipeline_mode<synchronous>, transform_indices = @transform_2, window_bounds = array<i64: 96, 256>}, {pipeline_mode = #tpu.pipeline_mode<synchronous>, transform_indices = @transform_3, window_bounds = array<i64: 3, 8, 4>}, {pipeline_mode = #tpu.pipeline_mode<synchronous>, transform_indices = @transform_4, window_bounds = array<i64: 8, 1>}, {pipeline_mode = #tpu.pipeline_mode<synchronous>, transform_indices = @transform_5, window_bounds = array<i64: 4, 72>}, {pipeline_mode = #tpu.pipeline_mode<synchronous>, transform_indices = @transform_6, window_bounds = array<i64: 4, 1>}, {pipeline_mode = #tpu.pipeline_mode<synchronous>, transform_indices = @transform_7, window_bounds = array<i64: 9, 256>}, {transform_indices = @transform_8, window_bounds = array<i64: 1, 4, 256>}]} {
    %c0 = arith.constant 0 : index
    %c0_0 = arith.constant 0 : index
    %c0_1 = arith.constant 0 : index
    %0 = vector.load %arg1[%c0, %c0_0, %c0_1] : memref<1x4x256xf32, #tpu.memory_space<vmem>>, vector<1x4x256xf32>
    %1 = vector.shape_cast %0 : vector<1x4x256xf32> to vector<4x256xf32>
    %c0_2 = arith.constant 0 : index
    %c0_3 = arith.constant 0 : index
    %2 = vector.load %arg2[%c0_2, %c0_3] : memref<256x96xf32, #tpu.memory_space<vmem>>, vector<256x96xf32>
    %cst = arith.constant dense<0.000000e+00> : vector<4x96xf32>
    %3 = tpu.matmul %1, %2, %cst {dimension_numbers = #tpu.dot_dimension_numbers<[1], [0], [0], [1], [0, 0, 1, 1], [], []>} : vector<4x256xf32>, vector<256x96xf32>, vector<4x96xf32> -> vector<4x96xf32>
    %4 = vector.extract_strided_slice %3 {offsets = [0, 0], sizes = [4, 32], strides = [1, 1]} : vector<4x96xf32> to vector<4x32xf32>
    %c0_4 = arith.constant 0 : index
    %c0_5 = arith.constant 0 : index
    %c0_6 = arith.constant 0 : index
    %5 = vector.load %arg4[%c0_4, %c0_5, %c0_6] : memref<3x8x4xf32, #tpu.memory_space<vmem>>, vector<1x8x4xf32>
    %6 = vector.shape_cast %5 : vector<1x8x4xf32> to vector<8x4xf32>
    %cst_7 = arith.constant dense<0.000000e+00> : vector<8x32xf32>
    %7 = tpu.matmul %6, %4, %cst_7 {dimension_numbers = #tpu.dot_dimension_numbers<[1], [0], [0], [1], [0, 0, 1, 1], [], []>} : vector<8x4xf32>, vector<4x32xf32>, vector<8x32xf32> -> vector<8x32xf32>
    %8 = vector.extract_strided_slice %3 {offsets = [0, 32], sizes = [4, 32], strides = [1, 1]} : vector<4x96xf32> to vector<4x32xf32>
    %c1 = arith.constant 1 : index
    %c0_8 = arith.constant 0 : index
    %c0_9 = arith.constant 0 : index
    %9 = vector.load %arg4[%c1, %c0_8, %c0_9] : memref<3x8x4xf32, #tpu.memory_space<vmem>>, vector<1x8x4xf32>
    %10 = vector.shape_cast %9 : vector<1x8x4xf32> to vector<8x4xf32>
    %cst_10 = arith.constant dense<0.000000e+00> : vector<8x32xf32>
    %11 = tpu.matmul %10, %8, %cst_10 {dimension_numbers = #tpu.dot_dimension_numbers<[1], [0], [0], [1], [0, 0, 1, 1], [], []>} : vector<8x4xf32>, vector<4x32xf32>, vector<8x32xf32> -> vector<8x32xf32>
    %12 = vector.extract_strided_slice %3 {offsets = [0, 64], sizes = [4, 32], strides = [1, 1]} : vector<4x96xf32> to vector<4x32xf32>
    %c2 = arith.constant 2 : index
    %c0_11 = arith.constant 0 : index
    %c0_12 = arith.constant 0 : index
    %13 = vector.load %arg4[%c2, %c0_11, %c0_12] : memref<3x8x4xf32, #tpu.memory_space<vmem>>, vector<1x8x4xf32>
    %14 = vector.shape_cast %13 : vector<1x8x4xf32> to vector<8x4xf32>
    %cst_13 = arith.constant dense<0.000000e+00> : vector<8x32xf32>
    %15 = tpu.matmul %14, %12, %cst_13 {dimension_numbers = #tpu.dot_dimension_numbers<[1], [0], [0], [1], [0, 0, 1, 1], [], []>} : vector<8x4xf32>, vector<4x32xf32>, vector<8x32xf32> -> vector<8x32xf32>
    %16 = tpu.concatenate %7, %11, %15 in 1 : vector<8x32xf32>, vector<8x32xf32>, vector<8x32xf32> -> vector<8x96xf32>
    %c0_14 = arith.constant 0 : index
    %c0_15 = arith.constant 0 : index
    %17 = vector.load %arg3[%c0_14, %c0_15] : memref<96x256xf32, #tpu.memory_space<vmem>>, vector<96x256xf32>
    %cst_16 = arith.constant dense<0.000000e+00> : vector<8x256xf32>
    %18 = tpu.matmul %16, %17, %cst_16 {dimension_numbers = #tpu.dot_dimension_numbers<[1], [0], [0], [1], [0, 0, 1, 1], [], []>} : vector<8x96xf32>, vector<96x256xf32>, vector<8x256xf32> -> vector<8x256xf32>
    %c0_17 = arith.constant 0 : index
    %c0_18 = arith.constant 0 : index
    %19 = vector.load %arg5[%c0_17, %c0_18] : memref<8x1xf32, #tpu.memory_space<vmem>>, vector<8x1xf32>
    %20 = vector.broadcast %19 : vector<8x1xf32> to vector<8x256xf32>
    %21 = arith.addf %18, %20 : vector<8x256xf32>
    %c0_19 = arith.constant 0 : index
    %c0_20 = arith.constant 0 : index
    %22 = vector.load %arg8[%c0_19, %c0_20] : memref<9x256xf32, #tpu.memory_space<vmem>>, vector<9x256xf32>
    %c17_i32 = arith.constant 17 : i32
    %23 = tpu.dynamic_rotate %21 by %c17_i32 dim 1 : vector<8x256xf32>, i32 -> vector<8x256xf32>
    %24 = vector.extract_strided_slice %22 {offsets = [0, 0], sizes = [1, 256], strides = [1, 1]} : vector<9x256xf32> to vector<1x256xf32>
    %25 = vector.broadcast %24 : vector<1x256xf32> to vector<8x256xf32>
    %26 = arith.mulf %23, %25 : vector<8x256xf32>
    %c16_i32 = arith.constant 16 : i32
    %27 = tpu.dynamic_rotate %21 by %c16_i32 dim 1 : vector<8x256xf32>, i32 -> vector<8x256xf32>
    %28 = vector.extract_strided_slice %22 {offsets = [1, 0], sizes = [1, 256], strides = [1, 1]} : vector<9x256xf32> to vector<1x256xf32>
    %29 = vector.broadcast %28 : vector<1x256xf32> to vector<8x256xf32>
    %30 = arith.mulf %27, %29 : vector<8x256xf32>
    %c15_i32 = arith.constant 15 : i32
    %31 = tpu.dynamic_rotate %21 by %c15_i32 dim 1 : vector<8x256xf32>, i32 -> vector<8x256xf32>
    %32 = vector.extract_strided_slice %22 {offsets = [2, 0], sizes = [1, 256], strides = [1, 1]} : vector<9x256xf32> to vector<1x256xf32>
    %33 = vector.broadcast %32 : vector<1x256xf32> to vector<8x256xf32>
    %34 = arith.mulf %31, %33 : vector<8x256xf32>
    %c1_i32 = arith.constant 1 : i32
    %35 = tpu.dynamic_rotate %21 by %c1_i32 dim 1 : vector<8x256xf32>, i32 -> vector<8x256xf32>
    %36 = vector.extract_strided_slice %22 {offsets = [3, 0], sizes = [1, 256], strides = [1, 1]} : vector<9x256xf32> to vector<1x256xf32>
    %37 = vector.broadcast %36 : vector<1x256xf32> to vector<8x256xf32>
    %38 = arith.mulf %35, %37 : vector<8x256xf32>
    %c255_i32 = arith.constant 255 : i32
    %39 = tpu.dynamic_rotate %21 by %c255_i32 dim 1 : vector<8x256xf32>, i32 -> vector<8x256xf32>
    %40 = vector.extract_strided_slice %22 {offsets = [5, 0], sizes = [1, 256], strides = [1, 1]} : vector<9x256xf32> to vector<1x256xf32>
    %41 = vector.broadcast %40 : vector<1x256xf32> to vector<8x256xf32>
    %42 = arith.mulf %39, %41 : vector<8x256xf32>
    %c241_i32 = arith.constant 241 : i32
    %43 = tpu.dynamic_rotate %21 by %c241_i32 dim 1 : vector<8x256xf32>, i32 -> vector<8x256xf32>
    %44 = vector.extract_strided_slice %22 {offsets = [6, 0], sizes = [1, 256], strides = [1, 1]} : vector<9x256xf32> to vector<1x256xf32>
    %45 = vector.broadcast %44 : vector<1x256xf32> to vector<8x256xf32>
    %46 = arith.mulf %43, %45 : vector<8x256xf32>
    %c240_i32 = arith.constant 240 : i32
    %47 = tpu.dynamic_rotate %21 by %c240_i32 dim 1 : vector<8x256xf32>, i32 -> vector<8x256xf32>
    %48 = vector.extract_strided_slice %22 {offsets = [7, 0], sizes = [1, 256], strides = [1, 1]} : vector<9x256xf32> to vector<1x256xf32>
    %49 = vector.broadcast %48 : vector<1x256xf32> to vector<8x256xf32>
    %50 = arith.mulf %47, %49 : vector<8x256xf32>
    %c239_i32 = arith.constant 239 : i32
    %51 = tpu.dynamic_rotate %21 by %c239_i32 dim 1 : vector<8x256xf32>, i32 -> vector<8x256xf32>
    %52 = vector.extract_strided_slice %22 {offsets = [8, 0], sizes = [1, 256], strides = [1, 1]} : vector<9x256xf32> to vector<1x256xf32>
    %53 = vector.broadcast %52 : vector<1x256xf32> to vector<8x256xf32>
    %54 = arith.mulf %51, %53 : vector<8x256xf32>
    %55 = tpu.concatenate %26, %30, %34, %38, %21, %42, %46, %50, %54 in 0 : vector<8x256xf32>, vector<8x256xf32>, vector<8x256xf32>, vector<8x256xf32>, vector<8x256xf32>, vector<8x256xf32>, vector<8x256xf32>, vector<8x256xf32>, vector<8x256xf32> -> vector<72x256xf32>
    %c0_21 = arith.constant 0 : index
    %c0_22 = arith.constant 0 : index
    %56 = vector.load %arg6[%c0_21, %c0_22] : memref<4x72xf32, #tpu.memory_space<vmem>>, vector<4x72xf32>
    %cst_23 = arith.constant dense<0.000000e+00> : vector<4x256xf32>
    %57 = tpu.matmul %56, %55, %cst_23 {dimension_numbers = #tpu.dot_dimension_numbers<[1], [0], [0], [1], [0, 0, 1, 1], [], []>} : vector<4x72xf32>, vector<72x256xf32>, vector<4x256xf32> -> vector<4x256xf32>
    %c0_24 = arith.constant 0 : index
    %c0_25 = arith.constant 0 : index
    %58 = vector.load %arg7[%c0_24, %c0_25] : memref<4x1xf32, #tpu.memory_space<vmem>>, vector<4x1xf32>
    %59 = vector.broadcast %58 : vector<4x1xf32> to vector<4x256xf32>
    %60 = arith.addf %57, %59 : vector<4x256xf32>
    %c0_26 = arith.constant 0 : index
    %c0_27 = arith.constant 0 : index
    %c0_28 = arith.constant 0 : index
    %61 = vector.load %arg9[%c0_26, %c0_27, %c0_28] : memref<1x4x256xf32, #tpu.memory_space<vmem>>, vector<1x4x256xf32>
    %62 = vector.shape_cast %61 : vector<1x4x256xf32> to vector<4x256xf32>
    %63 = vector.shape_cast %60 : vector<4x256xf32> to vector<1x4x256xf32>
    tpu.vector_store %arg9[%c0_26, %c0_27, %c0_28], %63 {strides = array<i32>} : memref<1x4x256xf32, #tpu.memory_space<vmem>>, vector<1x4x256xf32>,
    return
  }
  func.func @transform_0(%arg0: i32) -> (i32, i32, i32) {
    %c0_i32 = arith.constant 0 : i32
    %c0_i32_0 = arith.constant 0 : i32
    %c0_i32_1 = arith.constant 0 : i32
    return %arg0, %c0_i32, %c0_i32_0 : i32, i32, i32
  }
  func.func @transform_1(%arg0: i32) -> (i32, i32) {
    %c0_i32 = arith.constant 0 : i32
    %c0_i32_0 = arith.constant 0 : i32
    %c0_i32_1 = arith.constant 0 : i32
    return %c0_i32, %c0_i32_0 : i32, i32
  }
  func.func @transform_2(%arg0: i32) -> (i32, i32) {
    %c0_i32 = arith.constant 0 : i32
    %c0_i32_0 = arith.constant 0 : i32
    %c0_i32_1 = arith.constant 0 : i32
    return %c0_i32, %c0_i32_0 : i32, i32
  }
  func.func @transform_3(%arg0: i32) -> (i32, i32, i32) {
    %c0_i32 = arith.constant 0 : i32
    %c0_i32_0 = arith.constant 0 : i32
    %c0_i32_1 = arith.constant 0 : i32
    %c0_i32_2 = arith.constant 0 : i32
    return %c0_i32, %c0_i32_0, %c0_i32_1 : i32, i32, i32
  }
  func.func @transform_4(%arg0: i32) -> (i32, i32) {
    %c0_i32 = arith.constant 0 : i32
    %c0_i32_0 = arith.constant 0 : i32
    %c0_i32_1 = arith.constant 0 : i32
    return %c0_i32, %c0_i32_0 : i32, i32
  }
  func.func @transform_5(%arg0: i32) -> (i32, i32) {
    %c0_i32 = arith.constant 0 : i32
    %c0_i32_0 = arith.constant 0 : i32
    %c0_i32_1 = arith.constant 0 : i32
    return %c0_i32, %c0_i32_0 : i32, i32
  }
  func.func @transform_6(%arg0: i32) -> (i32, i32) {
    %c0_i32 = arith.constant 0 : i32
    %c0_i32_0 = arith.constant 0 : i32
    %c0_i32_1 = arith.constant 0 : i32
    return %c0_i32, %c0_i32_0 : i32, i32
  }
  func.func @transform_7(%arg0: i32) -> (i32, i32) {
    %c0_i32 = arith.constant 0 : i32
    %c0_i32_0 = arith.constant 0 : i32
    %c0_i32_1 = arith.constant 0 : i32
    return %c0_i32, %c0_i32_0 : i32, i32
  }
  func.func @transform_8(%arg0: i32) -> (i32, i32, i32) {
    %c0_i32 = arith.constant 0 : i32
    %c0_i32_0 = arith.constant 0 : i32
    %c0_i32_1 = arith.constant 0 : i32
    return %arg0, %c0_i32, %c0_i32_0 : i32, i32, i32
  }
}

</mosaic_0001>

<bundles_post_ra>
// kernel: tpu_custom_call.1
= control target key start
LH: loop header
LB: loop body
LE: loop exit
PB: predicated region body
PF: predicated region fallthrough
CT: control target
= control target key end

     0   :  { %13 = vsyncpa [#allocation3], 0  ;;  %s1324_s0 = inlined_call_operand.vmem [shape: f32[2,4,256], index: 0, kind: input, shape index: {}]   ;;  %s1325_s1 = inlined_call_operand.vmem [shape: f32[256,96], index: 1, kind: input, shape index: {}]   ;;  %s1326_s2 = inlined_call_operand.vmem [shape: f32[96,256], index: 2, kind: input, shape index: {}]   ;;  %s1327_s3 = inlined_call_operand.vmem [shape: f32[3,8,4], index: 3, kind: input, shape index: {}]   ;;  %s1328_s4 = inlined_call_operand.vmem [shape: f32[8,1], index: 4, kind: input, shape index: {}]   ;;  %s1329_s5 = inlined_call_operand.vmem [shape: f32[4,72], index: 5, kind: input, shape index: {}]   ;;  %s1330_s6 = inlined_call_operand.vmem [shape: f32[4,1], index: 6, kind: input, shape index: {}]   ;;  %s1331_s7 = inlined_call_operand.vmem [shape: f32[9,256], index: 7, kind: input, shape index: {}]   ;;  %s1332_s8 = inlined_call_operand.hbm [shape: f32[2,4,256], index: 8, kind: output, shape index: {}]  }
   0x1   :  { %15 = vsyncpa [#allocation3 + $0x1], 0  ;;  %s985_s27 = smov 0   ;;  %s987_s28 = smov 0  }
   0x2   :  { %s989_s29 = smov 0   ;;  %s991_s30 = smov 0  }
   0x3 LB: > { %s1006_s9 = sadd.s32 4294967295, %s926_s30   ;;  %s783_s10 = sadd.s32 4294967294, %s926_s30   ;;  %s926_s30 = sphi %s991_s30, %s1338_s30   ;;  %s922_s29 = sphi %s989_s29, %s1337_s29   ;;  %s918_s28 = sphi %s987_s28, %s1336_s28   ;;  %s914_s27 = sphi %s985_s27, %s1335_s27  }
   0x4   : > { %s1010_s11 = sadd.s32 1, %s926_s30   ;;  %s201_s12 = sadd.s32 1, %s922_s29 }
   0x5   : > { %s198_s13 = ssub.s32 %s926_s30, %s1010_s11  ;;  %p211_p0 = scmp.ne.s32.totalorder %s922_s29, %s918_s28 }
   0x6   : > { %p199_p1 = scmp.eq.s32.totalorder %s198_s13, 0  ;;  %p212_p2 = scmp.eq.s32.totalorder %s1006_s9, 1 }
   0x7   : > { %p217_p3 = scmp.ne.s32.totalorder %s918_s28, %s914_s27  ;;  %p218_p4 = scmp.eq.s32.totalorder %s783_s10, 1 }
   0x8   : > { %s1021_s14 = scalar_select %p199_p1, %s922_s29, %s201_s12  }
   0x9   : > { %p1023_p5 = por %p212_p2, %p211_p0  ;;  %p1027_p6 = por %p218_p4, %p217_p3 }
   0xa   : > { %p786_p7 = scmp.ge.s32.totalorder %s926_s30, 1  ;;  %p265_p8 = scmp.lt.s32.totalorder %s926_s30, 3 }
   0xc   : > { %p266_p9 = pnand %p786_p7, %p265_p8 }
   0xd   : > { %p299_p10 = scmp.lt.s32.totalorder (!%p266_p9), %s1006_s9, 1  ;;  %s928_s22 = smov (!%p266_p9), 96  }
   0xe   : > { %269 = sbr.rel (%p266_p9) target bundleno = 977 (0x3d1), region = 52  ;;  %s929_s23 = smov (!%p266_p9), 64  }
   0xf   : > { %s930_s20 = smov (!%p266_p9), 32   ;;  %s933_s19 = smov (!%p266_p9), 112  }
  0x10   : > { %s937_s24 = smov (!%p266_p9), 15   ;;  %s939_s25 = smov (!%p266_p9), 17  }
  0x11   : > { %s808_s10 = sshll.u32 (!%p266_p9), %s1006_s9, 3 }
  0x13   : > { %v320_v0 = vld [vmem:[%s1325_s1 + $0x78] sm:$0xff]  ;;  %v319_v2 = vld [vmem:[%s1325_s1 + $0x70] sm:$0xff]  ;;  %v318_v4 = vld [vmem:[%s1325_s1 + $0x68] sm:$0xff]  ;;  %s300_s13 = scalar_select %p299_p10, %s1006_s9, 1  ;;  %vm388_vm0 = vcmask 1043456   ;;  %vm384_vm1 = vcmask 31744  }
  0x14   : > { %v336_v1 = vld [vmem:[%s1325_s1 + $0xf8] sm:$0xff]  ;;  %343 = vmatpush.msra.mxu0 %v320_v0  ;;  %v335_v3 = vld [vmem:[%s1325_s1 + $0xf0] sm:$0xff]  ;;  %v334_v5 = vld [vmem:[%s1325_s1 + $0xe8] sm:$0xff]  ;;  %vm478_vm2 = vcmask 261120   ;;  %vm480_vm3 = vcmask 523264   ;;  %vm512_vm4 = vcmask 785408  }
  0x15   : > { %363 = vmatpush.msra.mxu1 %v336_v1  ;;  %v317_v6 = vld [vmem:[%s1325_s1 + $0x60] sm:$0xff]  ;;  %s807_s21 = sshll.u32 %s300_s13, 3  ;;  %v316_v8 = vld [vmem:[%s1325_s1 + $0x58] sm:$0xff]  ;;  %v315_v10 = vld [vmem:[%s1325_s1 + $0x50] sm:$0xff]  ;;  %vm657_vm13 = vcmask 588800   ;;  %s719_s13 = scalar_lea.hbm %s1332_s8, %s808_s10 }
  0x16   : > { %344 = vmatpush.msra.mxu0 %v319_v2  ;;  %v333_v7 = vld [vmem:[%s1325_s1 + $0xe0] sm:$0xff]  ;;  %v332_v9 = vld [vmem:[%s1325_s1 + $0xd8] sm:$0xff]  ;;  %s303_s12 = scalar_lea.vmem %s1324_s0, %s807_s21  ;;  %v331_v11 = vld [vmem:[%s1325_s1 + $0xd0] sm:$0xff]  ;;  %s938_s21 = smov 16  }
  0x17   : > { %364 = vmatpush.msra.mxu1 %v335_v3  ;;  %v314_v12 = vld [vmem:[%s1325_s1 + $0x48] sm:$0xff]  ;;  %v304_v14 = vld [vmem:[%s303_s12] sm:$0xff]  ;;  %v312_v17 = vld [vmem:[%s1325_s1 + $0x38] sm:$0xff]  ;;  %s934_s12 = smov 113  }
  0x18   : > { %345 = vmatpush.msra.mxu0 %v318_v4  ;;  %v330_v13 = vld [vmem:[%s1325_s1 + $0xc8] sm:$0xff]  ;;  %338 = vst [vmem:[#allocation1] ss:$2 sm:$0xff] %v304_v14  ;;  %v313_v15 = vld [vmem:[%s1325_s1 + $0x40] sm:$0xff]  ;;  %v328_v18 = vld [vmem:[%s1325_s1 + $0xb8] sm:$0xff] }
  0x19   : > { %365 = vmatpush.msra.mxu1 %v334_v5  ;;  %v329_v16 = vld [vmem:[%s1325_s1 + $0xc0] sm:$0xff]  ;;  %v311_v19 = vld [vmem:[%s1325_s1 + $0x30] sm:$0xff]  ;;  %v310_v21 = vld [vmem:[%s1325_s1 + $0x28] sm:$0xff] }
  0x1a   : > { %346 = vmatpush.msra.mxu0 %v317_v6  ;;  %v327_v20 = vld [vmem:[%s1325_s1 + $0xb0] sm:$0xff]  ;;  %v326_v22 = vld [vmem:[%s1325_s1 + $0xa8] sm:$0xff]  ;;  %v309_v23 = vld [vmem:[%s1325_s1 + $0x20] sm:$0xff] }
  0x1b   : > { %366 = vmatpush.msra.mxu1 %v333_v7  ;;  %v325_v24 = vld [vmem:[%s1325_s1 + $0xa0] sm:$0xff]  ;;  %v308_v25 = vld [vmem:[%s1325_s1 + $0x18] sm:$0xff]  ;;  %v307_v27 = vld [vmem:[%s1325_s1 + $0x10] sm:$0xff]  ;;  %v931_v7 = vmov 0  }
  0x1c   : > { %347 = vmatpush.msra.mxu0 %v316_v8  ;;  %v324_v26 = vld [vmem:[%s1325_s1 + $0x98] sm:$0xff]  ;;  %v323_v28 = vld [vmem:[%s1325_s1 + $0x90] sm:$0xff]  ;;  %v306_v29 = vld [vmem:[%s1325_s1 + $0x8] sm:$0xff]  ;;  %860 = vset.pattern.permute.xlu2 %v931_v7 }
  0x1d   : > { %367 = vmatpush.msra.mxu1 %v332_v9  ;;  %v322_v30 = vld [vmem:[%s1325_s1 + $0x88] sm:$0xff]  ;;  %v305_v31 = vld [vmem:[%s1325_s1] sm:$0xff]  ;;  %v795_v41 = vld [vmem:[%s1327_s3 + $0x10] sm:$0xff]  ;;  %861 = vset.pattern.permute.xlu0 %v931_v7 }
  0x1e   : > { %348 = vmatpush.msra.mxu0 %v315_v10  ;;  %v321_v32 = vld [vmem:[%s1325_s1 + $0x80] sm:$0xff]  ;;  %v792_v39 = vld [vmem:[%s1327_s3 + $0x8] sm:$0xff]  ;;  %v504_v43 = vld [vmem:[%s1326_s2 + $0xb0] sm:$0xff] }
  0x1f   : > { %368 = vmatpush.msra.mxu1 %v331_v11  ;;  %v339_v33 = vld.sshfl [vmem:[#allocation1] sm:$0xff pattern:$0x75316420]  ;;  %v340_v34 = vld.sshfl [vmem:[#allocation1 + $0x8] sm:$0xff pattern:$0x75316420] }
  0x20   : > { %349 = vmatpush.msra.mxu0 %v314_v12  ;;  %v383_v38 = vld [vmem:[%s1327_s3] sm:$0xff]  ;;  %v505_v44 = vld [vmem:[%s1326_s2 + $0xb8] sm:$0xff]  ;;  %v503_v46 = vld [vmem:[%s1326_s2 + $0xa8] sm:$0xff] }
  0x21   : > { %369 = vmatpush.msra.mxu1 %v330_v13  ;;  %v502_v45 = vld [vmem:[%s1326_s2 + $0xa0] sm:$0xff]  ;;  %v500_v47 = vld [vmem:[%s1326_s2 + $0x90] sm:$0xff]  ;;  %v501_v48 = vld [vmem:[%s1326_s2 + $0x98] sm:$0xff] }
  0x22   : > { %350 = vmatpush.msra.mxu0 %v313_v15  ;;  %v498_v49 = vld [vmem:[%s1326_s2 + $0x80] sm:$0xff]  ;;  %v499_v50 = vld [vmem:[%s1326_s2 + $0x88] sm:$0xff]  ;;  %v496_v51 = vld [vmem:[%s1326_s2 + $0x70] sm:$0xff] }
  0x23   : > { %370 = vmatpush.msra.mxu1 %v329_v16  ;;  %v497_v52 = vld [vmem:[%s1326_s2 + $0x78] sm:$0xff]  ;;  %v494_v53 = vld [vmem:[%s1326_s2 + $0x60] sm:$0xff]  ;;  %v495_v54 = vld [vmem:[%s1326_s2 + $0x68] sm:$0xff] }
  0x24   : > { %351 = vmatpush.msra.mxu0 %v312_v17  ;;  %v492_v55 = vld [vmem:[%s1326_s2 + $0x50] sm:$0xff]  ;;  %v493_v56 = vld [vmem:[%s1326_s2 + $0x58] sm:$0xff]  ;;  %v490_v60 = vld [vmem:[%s1326_s2 + $0x40] sm:$0xff] }
  0x25   : > { %371 = vmatpush.msra.mxu1 %v328_v18  ;;  %v491_v61 = vld [vmem:[%s1326_s2 + $0x48] sm:$0xff]  ;;  %v488_v62 = vld [vmem:[%s1326_s2 + $0x30] sm:$0xff]  ;;  %v489_v63 = vld [vmem:[%s1326_s2 + $0x38] sm:$0xff]  ;;  %v564_v18 = vlaneseq }
  0x26   : > { %352 = vmatpush.msra.mxu0 %v311_v19  ;;  %v486_v0 = vld [vmem:[%s1326_s2 + $0x20] sm:$0xff]  ;;  %v487_v1 = vld [vmem:[%s1326_s2 + $0x28] sm:$0xff]  ;;  %v484_v2 = vld [vmem:[%s1326_s2 + $0x10] sm:$0xff] }
  0x27   : > { %372 = vmatpush.msra.mxu1 %v327_v20  ;;  %v485_v3 = vld [vmem:[%s1326_s2 + $0x18] sm:$0xff]  ;;  %v482_v4 = vld [vmem:[%s1326_s2] sm:$0xff]  ;;  %v483_v5 = vld [vmem:[%s1326_s2 + $0x8] sm:$0xff]  ;;  %v1243_v20 = vand.u32 127, %v564_v18 }
  0x28   : > { %353 = vmatpush.msra.mxu0 %v310_v21  ;;  %v506_v6 = vld [vmem:[%s1328_s4] sm:$0xff] }
  0x29   : > { %373 = vmatpush.msra.mxu1 %v326_v22  ;;  %509 = vperm.xlu2 %860, %v506_v6   ;;  %v1248_v21 = vld [vmem:[%s1331_s7] sm:$0xff]  ;;  %v1253_v22 = vld [vmem:[%s1331_s7 + $0x8] sm:$0xff]  ;;  %vm643_vm5 = vcmp.lt.s32.totalorder %v1243_v20, 111  ;;  %vm632_vm6 = vcmp.lt.s32.totalorder %v1243_v20, 112  ;;  %vm621_vm7 = vcmp.lt.s32.totalorder %v1243_v20, 113  ;;  %vm610_vm8 = vcmp.lt.s32.totalorder %v1243_v20, 127 }
  0x2a   : > { %354 = vmatpush.msra.mxu0 %v309_v23  ;;  %v862_v23 = vld [vmem:[%s1331_s7 + $0x10] ss:$0 sm:$0xff]  ;;  %vm599_vm9 = vcmp.lt.s32.totalorder %v1243_v20, 1  ;;  %vm588_vm10 = vcmp.lt.s32.totalorder %v1243_v20, 15  ;;  %vm577_vm11 = vcmp.lt.s32.totalorder %v1243_v20, 16  ;;  %v580_v7 = vperm.slane %v1248_v21, 1 }
  0x2b   : > { %374 = vmatpush.msra.mxu1 %v325_v24  ;;  %v863_v24 = vld [vmem:[%s1331_s7 + $0x18] ss:$0 sm:$0xff]  ;;  %vm566_vm12 = vcmp.lt.s32.totalorder %v1243_v20, 17 }
  0x2c   : > { %355 = vmatpush.msra.mxu0 %v308_v25 }
  0x2d   : > { %375 = vmatpush.msra.mxu1 %v324_v26  ;;  %v635_v26 = vperm.slane %v1248_v21, 7 }
  0x2e   : > { %356 = vmatpush.msra.mxu0 %v307_v27 }
  0x2f   : > { %376 = vmatpush.msra.mxu1 %v323_v28  ;;  %v636_v28 = vperm.slane %v1253_v22, 7 }
  0x30   : > { %357 = vmatpush.msra.mxu0 %v306_v29 }
  0x31   : > { %377 = vmatpush.msra.mxu1 %v322_v30 }
  0x32   : > { %358 = vmatpush.msra.mxu0 %v305_v31 }
  0x33   : > { %378 = vmatpush.msra.mxu1 %v321_v32  ;;  %359 = vmatmul.f32.vlgmr.msra.gmra.mxu0 %v339_v33 }
  0x34   : > { %379 = vmatmul.f32.vlgmr.msra.gmra.mxu1 %v340_v34 }
  0x83   : > { %v510_v12 = vpop.permute.xlu2 %509 }
  0xb0   : > { %v360_v35 = vpop.f32.mrf.mxu0 }
  0xb1   : > { %v380_v36 = vpop.f32.mrf.mxu1 }
  0xb2   : > { %v381_v37 = vadd.f32 %v380_v36, %v360_v35 }
  0xb4   : > { %414 = vrot.lane.b32.xlu0 %v381_v37, %s928_s22  ;;  %790 = vmatpush.msk.msra.mxu2 %vm388_vm0, %v381_v37  ;;  %s936_s22 = smov 1  }
  0xb5   : > { %791 = vmatmul.msk.f32.vlgmr.msra.gmra.mxu2 %vm384_vm1, %v383_v38  ;;  %v624_v38 = vperm.slane %v1248_v21, 6 }
  0xbc   : > { %443 = vrot.lane.b32.xlu0 %v381_v37, %s929_s23 }
 0x126   : > { %v415_v40 = vpop.permute.xlu0 %414 }
 0x127   : > { %793 = vmatpush.msk.msra.mxu3 %vm388_vm0, %v415_v40  ;;  %v651_v40 = vld [vmem:[%s1330_s6] sm:$0xf] }
 0x128   : > { %794 = vmatmul.msk.f32.vlgmr.msra.gmra.mxu3 %vm384_vm1, %v792_v39  ;;  %v625_v39 = vperm.slane %v1253_v22, 6 }
 0x129   : > { %520 = vmatpush.msrb.mxu3 %v504_v43 }
 0x12b   : > { %521 = vmatpush.msrb.mxu3 %v502_v45 }
 0x12d   : > { %522 = vmatpush.msrb.mxu3 %v500_v47 }
 0x12e   : > { %v444_v42 = vpop.permute.xlu0 %443 }
 0x12f   : > { %796 = vmatpush.msk.msrb.mxu2 %vm388_vm0, %v444_v42  ;;  %523 = vmatpush.msrb.mxu3 %v498_v49  ;;  %v614_v49 = vperm.slane %v1253_v22, 5 }
 0x130   : > { %797 = vmatmul.msk.f32.vlgmr.msrb.gmra.mxu2 %vm384_vm1, %v795_v41 }
 0x131   : > { %540 = vmatpush.msra.mxu2 %v505_v44  ;;  %524 = vmatpush.msrb.mxu3 %v496_v51 }
 0x133   : > { %541 = vmatpush.msra.mxu2 %v503_v46  ;;  %525 = vmatpush.msrb.mxu3 %v494_v53 }
 0x135   : > { %542 = vmatpush.msra.mxu2 %v501_v48  ;;  %526 = vmatpush.msrb.mxu3 %v492_v55  ;;  %v613_v48 = vperm.slane %v1248_v21, 5  ;;  %v602_v55 = vperm.slane %v1248_v21, 3 }
 0x137   : > { %543 = vmatpush.msra.mxu2 %v499_v50  ;;  %527 = vmatpush.msrb.mxu3 %v490_v60 }
 0x138   : > { %v409_v57 = vpop.f32.mrf.mxu2 }
 0x139   : > { %544 = vmatpush.msra.mxu2 %v497_v52  ;;  %528 = vmatpush.msrb.mxu3 %v488_v62  ;;  %v591_v62 = vperm.slane %v1248_v21, 2 }
 0x13b   : > { %545 = vmatpush.msra.mxu2 %v495_v54  ;;  %529 = vmatpush.msrb.mxu3 %v486_v0  ;;  %v592_v0 = vperm.slane %v1253_v22, 2 }
 0x13d   : > { %546 = vmatpush.msra.mxu2 %v493_v56  ;;  %530 = vmatpush.msrb.mxu3 %v484_v2 }
 0x13f   : > { %547 = vmatpush.msra.mxu2 %v491_v61  ;;  %531 = vmatpush.msrb.mxu3 %v482_v4 }
 0x141   : > { %548 = vmatpush.msra.mxu2 %v489_v63 }
 0x143   : > { %549 = vmatpush.msra.mxu2 %v487_v1 }
 0x145   : > { %550 = vmatpush.msra.mxu2 %v485_v3 }
 0x147   : > { %551 = vmatpush.msra.mxu2 %v483_v5 }
 0x1ab   : > { %v438_v58 = vpop.f32.mrf.mxu3 }
 0x1ac   : > { %471 = vrot.lane.b32.xlu1 %v438_v58, %s930_s20  ;;  %s935_s20 = smov 127  }
 0x1b3   : > { %v467_v59 = vpop.f32.mrf.mxu2 }
 0x1b4   : > { %475 = vrot.lane.b32.xlu1 %v467_v59, %s929_s23  ;;  %s932_s23 = smov 111  }
 0x21e   : > { %v472_v8 = vpop.permute.xlu1 %471 }
 0x21f   : > { %v479_v9 = vsel %vm478_vm2, %v409_v57, %v472_v8  ;;  %v603_v57 = vperm.slane %v1253_v22, 3  ;;  %v581_v8 = vperm.slane %v1253_v22, 1 }
 0x226   : > { %v476_v10 = vpop.permute.xlu1 %475 }
 0x227   : > { %v481_v11 = vsel %vm480_vm3, %v479_v9, %v476_v10 }
 0x228   : > { %798 = vmatmul.msk.f32.vlgmr.msrb.gmra.mxu3 %vm512_vm4, %v481_v11  ;;  %799 = vmatmul.msk.f32.vlgmr.msra.gmra.mxu2 %vm512_vm4, %v481_v11  ;;  %v569_v11 = vperm.slane %v1248_v21, 0 }
 0x2ab   : > { %v533_v13 = vpop.f32.mrf.mxu3  ;;  %v553_v14 = vpop.f32.mrf.mxu2 }
 0x2ac   : > { %v1223_v15 = vadd.f32 %v533_v13, %v510_v12  ;;  %v1225_v16 = vadd.f32 %v553_v14, %v510_v12  ;;  %v570_v13 = vperm.slane %v1253_v22, 0 }
 0x2ae   : > { %641 = vrot.lane.b32.xlu0 %v1225_v16, %s932_s23  ;;  %628 = vrot.lane.b32.xlu1 %v1223_v15, %s933_s19 }
 0x2af   : > { %639 = vrot.lane.b32.xlu2 %v1223_v15, %s932_s23 }
 0x2b6   : > { %617 = vrot.lane.b32.xlu0 %v1223_v15, %s934_s12  ;;  %619 = vrot.lane.b32.xlu1 %v1225_v16, %s934_s12  ;;  %s723_s12 = sshll.u32 %s719_s13, 4  ;;  %s724_s12 = int_to_ptr.hbm [resolvable:$true] %s723_s12 }
 0x2b7   : > { %630 = vrot.lane.b32.xlu2 %v1225_v16, %s933_s19  ;;  %s878_s9 = sshra.s32 %s724_s12, 4  ;;  %s879_s9 = int_to_ptr.hbm [resolvable:$true] %s878_s9 }
 0x2b8   : > { %p885_p0 = scmp.lt.s32.totalorder %s879_s9, %s1332_s8 }
 0x2be   : > { %608 = vrot.lane.b32.xlu0 %v1225_v16, %s935_s20  ;;  %595 = vrot.lane.b32.xlu1 %v1223_v15, %s936_s22 }
 0x2bf   : > { %606 = vrot.lane.b32.xlu2 %v1223_v15, %s935_s20 }
 0x2c6   : > { %584 = vrot.lane.b32.xlu0 %v1223_v15, %s937_s24  ;;  %586 = vrot.lane.b32.xlu1 %v1225_v16, %s937_s24 }
 0x2c7   : > { %597 = vrot.lane.b32.xlu2 %v1225_v16, %s936_s22  ;;  %s880_s22 = scalar_lea.hbm %s879_s9, 8 }
 0x2c8   : > { %p881_p11 = scmp.ne.s32.totalorder %s879_s9, %s880_s22 }
 0x2ca   : > { %p882_p12 = pnand %p881_p11, %p1023_p5 }
 0x2cc   : > { %p883_p13 = pneg %p882_p12 }
 0x2ce   : > { %575 = vrot.lane.b32.xlu0 %v1225_v16, %s938_s21  ;;  %560 = vrot.lane.b32.xlu1 %v1223_v15, %s939_s25 }
 0x2cf   : > { %573 = vrot.lane.b32.xlu2 %v1223_v15, %s938_s21 }
 0x2d6   : > { %654 = vperm.xlu0 %861, %v651_v40  }
 0x2d7   : > { %562 = vrot.lane.b32.xlu2 %v1225_v16, %s939_s25  ;;  %s296_s25 = sand.u32 1, %s918_s28  }
 0x2d8   : > { %s787_s26 = sshll.u32 %s296_s25, 3  ;;  %s708_s20 = scalar_lea.sflag [#allocation3], %s296_s25 }
 0x2d9   : > { %s298_s23 = scalar_lea.vmem [#allocation2], %s787_s26  ;;  %s884_s26 = scalar_lea.hbm %s1332_s8, 16 }
 0x2da   : > { %s721_s19 = sshll.u32 %s298_s23, 4  ;;  %p886_p1 = scmp.lt.s32.totalorder %s884_s26, %s880_s22  ;;  %s722_s19 = int_to_ptr.vmem [resolvable:$true] %s721_s19 }
 0x2dc   : > { %p887_p2 = por %p886_p1, %p885_p0 }
 0x2de   : > { %p888_p3 = pnand %p887_p2, %p883_p13 }
 0x309   : > { %v640_v17 = vpop.permute.xlu2 %639 }
 0x311   : > { %v631_v19 = vpop.permute.xlu2 %630 }
 0x319   : > { %v607_v29 = vpop.permute.xlu2 %606 }
 0x320   : > { %v642_v25 = vpop.permute.xlu0 %641  ;;  %v629_v27 = vpop.permute.xlu1 %628 }
 0x321   : > { %v644_v30 = vsel %vm643_vm5, %v640_v17, %v642_v25  ;;  %v645_v31 = vsel %vm643_vm5, %v642_v25, %v640_v17  ;;  %v633_v32 = vsel %vm632_vm6, %v629_v27, %v631_v19  ;;  %v634_v33 = vsel %vm632_vm6, %v631_v19, %v629_v27  ;;  %v598_v47 = vpop.permute.xlu2 %597 }
 0x322   : > { %v648_v34 = vmul.f32 %v862_v23, %v644_v30  ;;  %v649_v35 = vmul.f32 %v863_v24, %v645_v31  ;;  %v637_v36 = vmul.f32 %v635_v26, %v633_v32  ;;  %v638_v37 = vmul.f32 %v636_v28, %v634_v33  ;;  %v650_v24 = vld [vmem:[%s1329_s5] sm:$0xf] }
 0x324   : > { %668 = vmatpush.msra.mxu3 %v648_v34  ;;  %688 = vmatpush.msrb.mxu0 %v649_v35 }
 0x326   : > { %669 = vmatpush.msra.mxu3 %v637_v36  ;;  %689 = vmatpush.msrb.mxu0 %v638_v37 }
 0x328   : > { %v618_v41 = vpop.permute.xlu0 %617  ;;  %v620_v42 = vpop.permute.xlu1 %619 }
 0x329   : > { %v622_v43 = vsel %vm621_vm7, %v618_v41, %v620_v42  ;;  %v623_v44 = vsel %vm621_vm7, %v620_v42, %v618_v41  ;;  %v574_v60 = vpop.permute.xlu2 %573 }
 0x32a   : > { %v626_v45 = vmul.f32 %v624_v38, %v622_v43  ;;  %v627_v46 = vmul.f32 %v625_v39, %v623_v44 }
 0x32c   : > { %670 = vmatpush.msra.mxu3 %v626_v45  ;;  %690 = vmatpush.msrb.mxu0 %v627_v46 }
 0x330   : > { %v609_v50 = vpop.permute.xlu0 %608  ;;  %v596_v51 = vpop.permute.xlu1 %595 }
 0x331   : > { %v611_v52 = vsel %vm610_vm8, %v607_v29, %v609_v50  ;;  %v612_v53 = vsel %vm610_vm8, %v609_v50, %v607_v29  ;;  %v600_v58 = vsel %vm599_vm9, %v596_v51, %v598_v47  ;;  %v601_v59 = vsel %vm599_vm9, %v598_v47, %v596_v51  ;;  %v563_v9 = vpop.permute.xlu2 %562 }
 0x332   : > { %v615_v54 = vmul.f32 %v613_v48, %v611_v52  ;;  %v616_v56 = vmul.f32 %v614_v49, %v612_v53  ;;  %v604_v61 = vmul.f32 %v602_v55, %v601_v59  ;;  %v605_v63 = vmul.f32 %v603_v57, %v600_v58 }
 0x334   : > { %671 = vmatpush.msra.mxu3 %v615_v54  ;;  %691 = vmatpush.msrb.mxu0 %v616_v56 }
 0x336   : > { %672 = vmatpush.msra.mxu3 %v1223_v15  ;;  %692 = vmatpush.msrb.mxu0 %v1225_v16 }
 0x338   : > { %v585_v1 = vpop.permute.xlu0 %584  ;;  %v587_v2 = vpop.permute.xlu1 %586  ;;  %673 = vmatpush.msra.mxu3 %v604_v61  ;;  %693 = vmatpush.msrb.mxu0 %v605_v63 }
 0x339   : > { %v589_v3 = vsel %vm588_vm10, %v585_v1, %v587_v2  ;;  %v590_v4 = vsel %vm588_vm10, %v587_v2, %v585_v1 }
 0x33a   : > { %v593_v5 = vmul.f32 %v591_v62, %v590_v4  ;;  %v594_v6 = vmul.f32 %v592_v0, %v589_v3 }
 0x33c   : > { %674 = vmatpush.msra.mxu3 %v593_v5  ;;  %694 = vmatpush.msrb.mxu0 %v594_v6 }
 0x340   : > { %v576_v10 = vpop.permute.xlu0 %575  ;;  %v561_v12 = vpop.permute.xlu1 %560 }
 0x341   : > { %v578_v14 = vsel %vm577_vm11, %v574_v60, %v576_v10  ;;  %v579_v15 = vsel %vm577_vm11, %v576_v10, %v574_v60  ;;  %v567_v16 = vsel %vm566_vm12, %v561_v12, %v563_v9  ;;  %v568_v17 = vsel %vm566_vm12, %v563_v9, %v561_v12 }
 0x342   : > { %v582_v18 = vmul.f32 %v580_v7, %v579_v15  ;;  %v583_v19 = vmul.f32 %v581_v8, %v578_v14  ;;  %v571_v23 = vmul.f32 %v569_v11, %v568_v17  ;;  %v572_v20 = vmul.f32 %v570_v13, %v567_v16 }
 0x344   : > { %675 = vmatpush.msra.mxu3 %v582_v18  ;;  %695 = vmatpush.msrb.mxu0 %v583_v19 }
 0x346   : > { %676 = vmatpush.msra.mxu3 %v571_v23  ;;  %696 = vmatpush.msrb.mxu0 %v572_v20 }
 0x347   : > { %800 = vmatmul.msk.f32.vlgmr.msra.gmra.mxu3 %vm657_vm13, %v650_v24  ;;  %801 = vmatmul.msk.f32.vlgmr.msrb.gmra.mxu0 %vm657_vm13, %v650_v24 }
 0x348   : > { %v655_v21 = vpop.permute.xlu0 %654 }
 0x3c4   : > { %v698_v22 = vpop.f32.mrf.mxu0 }
 0x3c5   : > { %v699_v25 = vadd.f32 %v698_v22, %v655_v21 }
 0x3c7   : > { %v703_v26 = vrot.slane %v699_v25, 4 }
 0x3ca   : > { %v678_v27 = vpop.f32.mrf.mxu3 }
 0x3cb   : > { %v679_v28 = vadd.f32 %v678_v27, %v655_v21 }
 0x3cd   : > { %v704_v29 = vsel %vm388_vm0, %v679_v28, %v703_v26 }
 0x3ce   : > { %706 = vst [vmem:[%s298_s23] sm:$0xff] %v704_v29 }
 0x3cf   : > { %891 = shalt.err (!%p888_p3)
}
 0x3d0   : > { %809 = dma.vmem_to_hbm [thread:$0]  (%p1023_p5), %s722_s19, 128, %s724_s12, %s708_s20  }
 0x3d1 PF: > { %p815_p4 = scmp.ge.s32.totalorder %s926_s30, 2  ;;  %s735_s25 = sand.u32 1, %s914_s27  }
 0x3d2   : > { %s736_s18 = scalar_lea.sflag [#allocation3], %s735_s25 }
 0x3d3   : > { %p812_p7 = pnand %p815_p4, %p1027_p6 }
 0x3d5   : > { %p813_p8 = pneg %p812_p7 }
 0x3d7   : > { %909 = dma.done.wait (%p813_p8), %s736_s18, 128  }
 0x3d8   : > { %911 = vsyncadd (%p813_p8), %s736_s18, 4294967168  ;;  %p18_p9 = scmp.ge.s32.totalorder %s1010_s11, 4   ;;  %s1335_s27 = smov %s918_s28 }
 0x3d9   : > { %s1336_s28 = smov %s922_s29  ;;  %s1337_s29 = smov %s1021_s14 }
 0x3da   : > { %s1338_s30 = smov %s1010_s11  ;;  %20 = sbr.rel (!%p18_p9) target bundleno = 3 (0x3), region = 89 }
 0x3df   :  { %742 = vsyncpa [#allocation3], 1 }
 0x3e0   :  { %744 = vsyncpa [#allocation3 + $0x1], 1 }

</bundles_post_ra>
